<compile_context>
chip_gen: v7x
topology: tpu7x:2x2x1
jax: 0.10.0
libtpu: 0.0.40
codegen_flags: <defaults>
</compile_context>

<pallas_src>
import functools

import jax
import jax.numpy as jnp
from jax.experimental import pallas as pl
from jax.experimental.pallas import tpu as pltpu


# ---------------------------------------------------------------------------
# helpers
# ---------------------------------------------------------------------------
def _round_up(x: int, m: int) -> int:
    return ((x + m - 1) // m) * m


def _cdiv(a: int, b: int) -> int:
    return -(-a // b)


def _pad_to(a, target_shape):
    pads = [(0, t - s) for s, t in zip(a.shape, target_shape)]
    if any(hi for _, hi in pads):
        return jnp.pad(a, pads)
    return a


# ---------------------------------------------------------------------------
# kernel: fused fc1 -> ReLU -> fc2 over one batch tile
# ---------------------------------------------------------------------------
def simple_dnn_kernel(x_ref, w1_ref, b1_ref, w2_ref, b2_ref, o_ref):
    # Cast activations to bf16 inside the kernel (no wrapper cast pass).
    x = x_ref[...].astype(jnp.bfloat16)                       # (TB, in_dim)
    # fc1: (TB, in_dim) @ (in_dim, hid_p) -> f32 accumulate on the MXU.
    h = jnp.dot(x, w1_ref[...], preferred_element_type=jnp.float32)
    # bias-add + ReLU in f32 (VPU-friendly on every generation, incl. v5e).
    h = jnp.maximum(h + b1_ref[...], 0.0)
    # fc2: bf16 operands, f32 accumulation; output stays narrow (out_dim).
    y = jnp.dot(h.astype(jnp.bfloat16), w2_ref[...],
                preferred_element_type=jnp.float32)           # (TB, out_dim)
    o_ref[...] = y + b2_ref[...]


# ---------------------------------------------------------------------------
# parameter preparation (done ONCE, outside the per-call hot path)
# ---------------------------------------------------------------------------
def prepare_params(w1, b1, w2, b2):
    """Torch-layout params (w: [out, in], b: [out]) -> transposed bf16 weights
    with only the hidden (lane/K) dim padded to 128, plus f32 2-D biases."""
    hid_dim, in_dim = w1.shape
    out_dim = w2.shape[0]
    hid_p = _round_up(hid_dim, 128)

    # W1: [in_dim, hid_p]  (pad only the N/lane dim; K stays the true in_dim)
    # W2: [hid_p, out_dim] (pad only the K dim; N stays the true out_dim)
    # Zero padding keeps the math exact: padded hidden cols are 0 after
    # bias+ReLU, and padded W2 rows are 0, so they contribute nothing.
    w1_t = _pad_to(jnp.asarray(w1, jnp.float32).T, (in_dim, hid_p)).astype(jnp.bfloat16)
    w2_t = _pad_to(jnp.asarray(w2, jnp.float32).T, (hid_p, out_dim)).astype(jnp.bfloat16)
    b1_2d = _pad_to(jnp.asarray(b1, jnp.float32)[None, :], (1, hid_p))
    b2_2d = jnp.asarray(b2, jnp.float32)[None, :]

    dims = (in_dim, hid_dim, out_dim, hid_p)
    return (w1_t, b1_2d, w2_t, b2_2d), dims


# ---------------------------------------------------------------------------
# forward
# ---------------------------------------------------------------------------
@functools.partial(jax.jit, static_argnames=("dims",))
def simple_dnn_forward(x, params, dims):
    """x: [B, in_dim]; params from prepare_params(). Returns [B, out_dim] f32."""
    w1_t, b1_2d, w2_t, b2_2d = params
    in_dim, hid_dim, out_dim, hid_p = dims

    B = x.shape[0]
    CAP = 2048                       # rows per batch tile (amortizes ~0.35 us/step)
    B16 = _round_up(B, 16)           # bf16 packs 2 rows/sublane -> 16-row multiple
    if B16 <= 16:
        n_blocks = 1                 # tiny batch: single step
    else:
        # >= 2 blocks so the "parallel" batch axis feeds both v7x TensorCores,
        # and cdiv-based sizing keeps pad waste bounded (< one 16-row group
        # per block) instead of rounding up to a full CAP multiple.
        n_blocks = max(_cdiv(B16, CAP), 2)
    TB = _round_up(_cdiv(B16, n_blocks), 16)
    B_pad = n_blocks * TB

    # Only the batch dim is ever padded (columns stay at the true in_dim);
    # skip the pad op entirely when the batch already tiles evenly.
    x_in = _pad_to(x, (B_pad, in_dim)) if B_pad != B else x

    out = pl.pallas_call(
        simple_dnn_kernel,
        out_shape=jax.ShapeDtypeStruct((B_pad, out_dim), jnp.float32),
        grid=(n_blocks,),
        in_specs=[
            pl.BlockSpec((TB, in_dim), lambda i: (i, 0)),      # x: batch-tiled, unpadded cols
            pl.BlockSpec((in_dim, hid_p), lambda i: (0, 0)),   # W1: VMEM-resident
            pl.BlockSpec((1, hid_p), lambda i: (0, 0)),        # b1: resident
            pl.BlockSpec((hid_p, out_dim), lambda i: (0, 0)),  # W2: resident
            pl.BlockSpec((1, out_dim), lambda i: (0, 0)),      # b2: resident
        ],
        out_specs=pl.BlockSpec((TB, out_dim), lambda i: (i, 0)),
        compiler_params=pltpu.CompilerParams(
            dimension_semantics=("parallel",),  # batch axis -> both TCs on v7x
        ),
    )(x_in, w1_t, b1_2d, w2_t, b2_2d)

    return out[:B] if B_pad != B else out


# ---------------------------------------------------------------------------
# deterministic init mimicking nn.Linear's uniform(-1/sqrt(fan_in), ...)
# ---------------------------------------------------------------------------
def init_params(key, in_dim, hid_dim, out_dim):
    k1, k2, k3, k4 = jax.random.split(key, 4)
    bound1 = 1.0 / jnp.sqrt(in_dim)
    bound2 = 1.0 / jnp.sqrt(hid_dim)
    w1 = jax.random.uniform(k1, (hid_dim, in_dim), jnp.float32, -bound1, bound1)
    b1 = jax.random.uniform(k2, (hid_dim,), jnp.float32, -bound1, bound1)
    w2 = jax.random.uniform(k3, (out_dim, hid_dim), jnp.float32, -bound2, bound2)
    b2 = jax.random.uniform(k4, (out_dim,), jnp.float32, -bound2, bound2)
    return w1, b1, w2, b2


if __name__ == "__main__":
    key = jax.random.PRNGKey(0)
    in_dim, hid_dim, out_dim = 32, 64, 16
    batch = 8

    kx, kp = jax.random.split(key)
    x = jax.random.normal(kx, (batch, in_dim), jnp.float32)
    w1, b1, w2, b2 = init_params(kp, in_dim, hid_dim, out_dim)

    # One-time parameter prep (transpose / pad lane dims / bf16 cast).
    params, dims = prepare_params(w1, b1, w2, b2)

    out = simple_dnn_forward(x, params, dims)
    jax.block_until_ready(out)

    # Pure-JAX f32 reference (same math as the PyTorch module).
    h_ref = jnp.maximum(x @ w1.T + b1, 0.0)
    y_ref = h_ref @ w2.T + b2

    assert out.shape == (batch, out_dim)
    # bf16 matmul operands with f32 accumulation: loosen tolerance vs. f32 ref.
    assert jnp.allclose(out, y_ref, atol=2e-2, rtol=2e-2), (
        float(jnp.max(jnp.abs(out - y_ref))))

    print("KERNEL_OK")
</pallas_src>

<mosaic_0001>
module attributes {stable_mosaic.version = 11 : i64} {
  func.func @simple_dnn_kernel(%arg0: i32, %arg1: memref<16x32xf32, #tpu.memory_space<vmem>>, %arg2: memref<32x128xbf16, #tpu.memory_space<vmem>>, %arg3: memref<1x128xf32, #tpu.memory_space<vmem>>, %arg4: memref<128x16xbf16, #tpu.memory_space<vmem>>, %arg5: memref<1x16xf32, #tpu.memory_space<vmem>>, %arg6: memref<16x16xf32, #tpu.memory_space<vmem>>) attributes {dimension_semantics = [#tpu.dimension_semantics<parallel>], iteration_bounds = array<i64: 1>, scalar_prefetch = 0 : i64, scratch_operands = 0 : i64, tpu.core_type = #tpu.core_type<tc>, window_params = [{transform_indices = @transform_0, window_bounds = array<i64: 16, 32>}, {pipeline_mode = #tpu.pipeline_mode<synchronous>, transform_indices = @transform_1, window_bounds = array<i64: 32, 128>}, {pipeline_mode = #tpu.pipeline_mode<synchronous>, transform_indices = @transform_2, window_bounds = array<i64: 1, 128>}, {pipeline_mode = #tpu.pipeline_mode<synchronous>, transform_indices = @transform_3, window_bounds = array<i64: 128, 16>}, {pipeline_mode = #tpu.pipeline_mode<synchronous>, transform_indices = @transform_4, window_bounds = array<i64: 1, 16>}, {transform_indices = @transform_5, window_bounds = array<i64: 16, 16>}]} {
    %c0 = arith.constant 0 : index
    %c0_0 = arith.constant 0 : index
    %0 = vector.load %arg1[%c0, %c0_0] : memref<16x32xf32, #tpu.memory_space<vmem>>, vector<16x32xf32>
    %1 = arith.truncf %0 : vector<16x32xf32> to vector<16x32xbf16>
    %c0_1 = arith.constant 0 : index
    %c0_2 = arith.constant 0 : index
    %2 = vector.load %arg2[%c0_1, %c0_2] : memref<32x128xbf16, #tpu.memory_space<vmem>>, vector<32x128xbf16>
    %cst = arith.constant dense<0.000000e+00> : vector<16x128xf32>
    %3 = tpu.matmul %1, %2, %cst {dimension_numbers = #tpu.dot_dimension_numbers<[1], [0], [0], [1], [0, 0, 1, 1], [], []>} : vector<16x32xbf16>, vector<32x128xbf16>, vector<16x128xf32> -> vector<16x128xf32>
    %c0_3 = arith.constant 0 : index
    %c0_4 = arith.constant 0 : index
    %4 = vector.load %arg3[%c0_3, %c0_4] : memref<1x128xf32, #tpu.memory_space<vmem>>, vector<1x128xf32>
    %5 = vector.broadcast %4 : vector<1x128xf32> to vector<16x128xf32>
    %6 = arith.addf %3, %5 : vector<16x128xf32>
    %cst_5 = arith.constant 0.000000e+00 : f32
    %7 = vector.broadcast %cst_5 : f32 to vector<16x128xf32>
    %8 = arith.maximumf %6, %7 : vector<16x128xf32>
    %9 = arith.truncf %8 : vector<16x128xf32> to vector<16x128xbf16>
    %c0_6 = arith.constant 0 : index
    %c0_7 = arith.constant 0 : index
    %10 = vector.load %arg4[%c0_6, %c0_7] : memref<128x16xbf16, #tpu.memory_space<vmem>>, vector<128x16xbf16>
    %cst_8 = arith.constant dense<0.000000e+00> : vector<16x16xf32>
    %11 = tpu.matmul %9, %10, %cst_8 {dimension_numbers = #tpu.dot_dimension_numbers<[1], [0], [0], [1], [0, 0, 1, 1], [], []>} : vector<16x128xbf16>, vector<128x16xbf16>, vector<16x16xf32> -> vector<16x16xf32>
    %c0_9 = arith.constant 0 : index
    %c0_10 = arith.constant 0 : index
    %12 = vector.load %arg5[%c0_9, %c0_10] : memref<1x16xf32, #tpu.memory_space<vmem>>, vector<1x16xf32>
    %13 = vector.broadcast %12 : vector<1x16xf32> to vector<16x16xf32>
    %14 = arith.addf %11, %13 : vector<16x16xf32>
    %c0_11 = arith.constant 0 : index
    %c0_12 = arith.constant 0 : index
    %15 = vector.load %arg6[%c0_11, %c0_12] : memref<16x16xf32, #tpu.memory_space<vmem>>, vector<16x16xf32>
    tpu.vector_store %arg6[%c0_11, %c0_12], %14 {strides = array<i32>} : memref<16x16xf32, #tpu.memory_space<vmem>>, vector<16x16xf32>,
    return
  }
  func.func @transform_0(%arg0: i32) -> (i32, i32) {
    %c0_i32 = arith.constant 0 : i32
    %c0_i32_0 = arith.constant 0 : i32
    return %arg0, %c0_i32 : i32, i32
  }
  func.func @transform_1(%arg0: i32) -> (i32, i32) {
    %c0_i32 = arith.constant 0 : i32
    %c0_i32_0 = arith.constant 0 : i32
    %c0_i32_1 = arith.constant 0 : i32
    return %c0_i32, %c0_i32_0 : i32, i32
  }
  func.func @transform_2(%arg0: i32) -> (i32, i32) {
    %c0_i32 = arith.constant 0 : i32
    %c0_i32_0 = arith.constant 0 : i32
    %c0_i32_1 = arith.constant 0 : i32
    return %c0_i32, %c0_i32_0 : i32, i32
  }
  func.func @transform_3(%arg0: i32) -> (i32, i32) {
    %c0_i32 = arith.constant 0 : i32
    %c0_i32_0 = arith.constant 0 : i32
    %c0_i32_1 = arith.constant 0 : i32
    return %c0_i32, %c0_i32_0 : i32, i32
  }
  func.func @transform_4(%arg0: i32) -> (i32, i32) {
    %c0_i32 = arith.constant 0 : i32
    %c0_i32_0 = arith.constant 0 : i32
    %c0_i32_1 = arith.constant 0 : i32
    return %c0_i32, %c0_i32_0 : i32, i32
  }
  func.func @transform_5(%arg0: i32) -> (i32, i32) {
    %c0_i32 = arith.constant 0 : i32
    %c0_i32_0 = arith.constant 0 : i32
    return %arg0, %c0_i32 : i32, i32
  }
}

</mosaic_0001>

<bundles_post_ra>
// kernel: simple_dnn_forward.1
= control target key start
LH: loop header
LB: loop body
LE: loop exit
PB: predicated region body
PF: predicated region fallthrough
CT: control target
= control target key end

     0   :  { %v279_v0 = vmov 0.0   ;;  %vm280_vm0 = vmmov 0   ;;  %vm47_vm1 = vcmask 261120   ;;  %vm207_vm2 = vcmask 130048   ;;  %s359_s1 = inlined_call_operand.vmem [shape: bf16[32,128], index: 1, kind: input, shape index: {}]   ;;  %s360_s0 = inlined_call_operand.vmem [shape: f32[16,32], index: 0, kind: input, shape index: {}]   ;;  %s361_s3 = inlined_call_operand.vmem [shape: bf16[128,16], index: 3, kind: input, shape index: {}]   ;;  %s362_s2 = inlined_call_operand.vmem [shape: f32[1,128], index: 2, kind: input, shape index: {}]   ;;  %s363_s4 = inlined_call_operand.vmem [shape: f32[1,16], index: 4, kind: input, shape index: {}]   ;;  %s364_s5 = inlined_call_operand.vmem [shape: f32[16,16], index: 5, kind: output, shape index: {}]  }
   0x1   :  { %239 = vmatprep.subr.bf16.mxu0 %v279_v0  ;;  %v269_v1 = vld [vmem:[%s359_s1] sm:$0xff]   ;;  %243 = vmatprep.mubr.msk.bf16.mxu0 %vm280_vm0, %v279_v0  ;;  %v270_v2 = vld [vmem:[%s359_s1 + $0x8] sm:$0xff]   ;;  %v273_v8 = vld [vmem:[%s361_s3 + $0x10] sm:$0xff]  }
   0x2   :  { %247 = vmatprep.subr.bf16.mxu1 %v279_v0  ;;  %263 = vmatprep.mubr.msk.bf16.mxu1 %vm280_vm0, %v279_v0  ;;  %v21_v3 = vld [vmem:[%s360_s0] sm:$0xff]  ;;  %v22_v4 = vld [vmem:[%s360_s0 + $0x8] sm:$0xff]  ;;  %v274_v9 = vld [vmem:[%s361_s3 + $0x18] sm:$0xff]  }
   0x3   :  { %240 = vmatpush3.bf16.msra.mxu0 %v269_v1  ;;  %v271_v5 = vld [vmem:[%s361_s3] sm:$0xff]   ;;  %v23_v6 = vpack.c.bf16 %v22_v4, %v21_v3  ;;  %v272_v7 = vld [vmem:[%s361_s3 + $0x8] sm:$0xff]   ;;  %v277_v12 = vld [vmem:[%s361_s3 + $0x30] sm:$0xff]  }
   0x4   :  { %241 = vmatprep.subr.bf16.mxu0 %v279_v0  ;;  %248 = vmatpush3.bf16.msra.mxu1 %v271_v5  ;;  %v275_v10 = vld [vmem:[%s361_s3 + $0x20] sm:$0xff]   ;;  %v276_v11 = vld [vmem:[%s361_s3 + $0x28] sm:$0xff]   ;;  %v278_v13 = vld [vmem:[%s361_s3 + $0x38] sm:$0xff]  }
   0x5   :  { %249 = vmatprep.subr.bf16.mxu1 %v279_v0  ;;  %v214_v14 = vld [vmem:[%s362_s2] ss:$0 sm:$0xff] }
   0x6   :  { %v218_v24 = vld [vmem:[%s363_s4] ss:$0 sm:$0xff] }
   0x7   :  { %242 = vmatpush3.bf16.msra.mxu0 %v270_v2 }
   0x8   :  { %250 = vmatpush3.bf16.msra.mxu1 %v272_v7 }
   0x9   :  { %251 = vmatprep.subr.bf16.mxu1 %v279_v0 }
   0xa   :  { %244 = vmatmul.mubr.msk.bf16.vlgmr.msra.gmra.mrb[0].mxu0 %vm47_vm1, %v23_v6 }
   0xc   :  { %252 = vmatpush3.bf16.msra.mxu1 %v273_v8 }
   0xd   :  { %253 = vmatprep.subr.bf16.mxu1 %v279_v0 }
  0x10   :  { %254 = vmatpush3.bf16.msra.mxu1 %v274_v9 }
  0x11   :  { %255 = vmatprep.subr.bf16.mxu1 %v279_v0 }
  0x14   :  { %256 = vmatpush3.bf16.msra.mxu1 %v275_v10 }
  0x15   :  { %257 = vmatprep.subr.bf16.mxu1 %v279_v0 }
  0x18   :  { %258 = vmatpush3.bf16.msra.mxu1 %v276_v11 }
  0x19   :  { %259 = vmatprep.subr.bf16.mxu1 %v279_v0 }
  0x1c   :  { %260 = vmatpush3.bf16.msra.mxu1 %v277_v12 }
  0x1d   :  { %261 = vmatprep.subr.bf16.mxu1 %v279_v0 }
  0x20   :  { %262 = vmatpush3.bf16.msra.mxu1 %v278_v13 }
  0xdd   :  { %v85_v15 = vpop.f32.mrb[0].mxu0 }
  0xde   :  { %v86_v16 = vadd.f32 %v214_v14, %v85_v15  ;;  %v245_v17 = vpop.f32.mrb[1].mxu0 }
  0xdf   :  { %v88_v18 = vpop.f32.mrb[2].mxu0 }
  0xe0   :  { %v89_v19 = vadd.f32 %v214_v14, %v88_v18  ;;  %v246_v20 = vpop.f32.mrb[3].mxu0  ;;  %v92_v21 = vmax.f32 %v86_v16, 0.0 }
  0xe2   :  { %v93_v22 = vmax.f32 %v89_v19, 0.0 }
  0xe4   :  { %v94_v23 = vpack.c.bf16 %v93_v22, %v92_v21 }
  0xe6   :  { %264 = vmatmul.mubr.bf16.vlgmr.msra.gmra.mrb[0].mxu1 %v94_v23 }
 0x1b9   :  { %v200_v25 = vpop.f32.mrb[0].mxu1 }
 0x1ba   :  { %v201_v26 = vadd.f32 %v218_v24, %v200_v25  ;;  %v265_v27 = vpop.f32.mrb[1].mxu1 }
 0x1bb   :  { %v203_v28 = vpop.f32.mrb[2].mxu1 }
 0x1bc   :  { %208 = vst.msk [vmem:[%s364_s5] sm:$0xff] %vm207_vm2, %v201_v26  ;;  %v204_v29 = vadd.f32 %v218_v24, %v203_v28  ;;  %v266_v30 = vpop.f32.mrb[3].mxu1 }
 0x1be   :  { %209 = vst.msk [vmem:[%s364_s5 + $0x8] sm:$0xff] %vm207_vm2, %v204_v29 }

</bundles_post_ra>
